<compile_context>
chip_gen: v7x
topology: tpu7x:2x2x1
jax: 0.10.0
libtpu: 0.0.40
codegen_flags: <defaults>
</compile_context>

<pallas_src>
import jax
import jax.numpy as jnp
from jax.experimental import pallas as pl
from jax.experimental.pallas import tpu as pltpu


def gcn_kernel(a_ref, x_ref, w_ref, b_ref, o_ref, acc_ref):
    k = pl.program_id(1)

    @pl.when(k == 0)
    def _init():
        acc_ref[...] = jnp.zeros_like(acc_ref)

    # Message passing + sum reduction (one k-slab of A @ X), accumulated in f32.
    a_tile = a_ref[...].astype(jnp.float32)  # bf16 0/1 adjacency tile -> f32
    acc_ref[...] += jnp.dot(a_tile, x_ref[...], preferred_element_type=jnp.float32)

    # NodeApplyModule: Linear (agg @ W_t + b) + ReLU, only after the reduction.
    @pl.when(k == pl.num_programs(1) - 1)
    def _finalize():
        h = jnp.dot(acc_ref[...], w_ref[...], preferred_element_type=jnp.float32)
        h = h + b_ref[...]
        o_ref[...] = jnp.maximum(h, 0.0).astype(o_ref.dtype)


def gcn_forward(adj, feature, weight, bias, *, tm=128, tk=128):
    """adj: (N, N) dense A[dst, src]; feature: (N, Fin);
    weight: (Fout, Fin) [nn.Linear convention]; bias: (Fout,)."""
    n = adj.shape[0]
    in_feats = feature.shape[1]
    out_feats = weight.shape[0]

    # Padded sizes: rows/k to tile multiples, feature dims to lane-dense 128.
    rows_pad = pl.cdiv(n, tm) * tm
    k_pad = pl.cdiv(n, tk) * tk
    fin_pad = pl.cdiv(in_feats, 128) * 128
    fout_pad = pl.cdiv(out_feats, 128) * 128

    # Zero-pad operands (zeros are exact no-ops for this computation).
    a_p = jnp.zeros((rows_pad, k_pad), jnp.bfloat16)
    a_p = a_p.at[:n, :n].set(adj.astype(jnp.bfloat16))          # 0/1 -> exact bf16
    x_p = jnp.zeros((k_pad, fin_pad), jnp.float32)
    x_p = x_p.at[:n, :in_feats].set(feature.astype(jnp.float32))
    w_t = jnp.zeros((fin_pad, fout_pad), jnp.float32)
    w_t = w_t.at[:in_feats, :out_feats].set(weight.T.astype(jnp.float32))
    b_p = jnp.zeros((1, fout_pad), jnp.float32)
    b_p = b_p.at[0, :out_feats].set(bias.astype(jnp.float32))

    grid = (rows_pad // tm, k_pad // tk)

    flops = 2 * rows_pad * k_pad * fin_pad + 2 * rows_pad * fin_pad * fout_pad
    bytes_accessed = (a_p.size * 2 + x_p.size * 4 + w_t.size * 4 + b_p.size * 4
                      + rows_pad * fout_pad * 4)

    out = pl.pallas_call(
        gcn_kernel,
        out_shape=jax.ShapeDtypeStruct((rows_pad, fout_pad), jnp.float32),
        grid_spec=pltpu.PrefetchScalarGridSpec(
            num_scalar_prefetch=0,
            grid=grid,
            in_specs=[
                pl.BlockSpec((tm, tk), lambda i, k: (i, k)),          # A tile
                pl.BlockSpec((tk, fin_pad), lambda i, k: (k, 0)),     # X tile
                pl.BlockSpec((fin_pad, fout_pad), lambda i, k: (0, 0)),  # W_t (resident)
                pl.BlockSpec((1, fout_pad), lambda i, k: (0, 0)),     # bias (resident)
            ],
            out_specs=pl.BlockSpec((tm, fout_pad), lambda i, k: (i, 0)),
            scratch_shapes=[pltpu.VMEM((tm, fin_pad), jnp.float32)],
        ),
        compiler_params=pltpu.CompilerParams(
            dimension_semantics=("parallel", "arbitrary"),
        ),
        cost_estimate=pl.CostEstimate(
            flops=flops, transcendentals=0, bytes_accessed=bytes_accessed),
    )(a_p, x_p, w_t, b_p)

    return out[:n, :out_feats].astype(feature.dtype)


def gcn_reference(adj, feature, weight, bias):
    agg = adj.astype(jnp.float32) @ feature.astype(jnp.float32)
    return jnp.maximum(agg @ weight.T + bias, 0.0)


def _run_case(key, n, in_feats, out_feats):
    k_adj, k_x, k_w, k_b = jax.random.split(key, 4)
    adj = (jax.random.uniform(k_adj, (n, n)) < 0.3).astype(jnp.float32)
    x = jax.random.normal(k_x, (n, in_feats), dtype=jnp.float32)
    bound = 1.0 / jnp.sqrt(in_feats)
    w = jax.random.uniform(k_w, (out_feats, in_feats), minval=-bound, maxval=bound)
    b = jax.random.uniform(k_b, (out_feats,), minval=-bound, maxval=bound)

    out = jax.block_until_ready(gcn_forward(adj, x, w, b))
    ref = gcn_reference(adj, x, w, b)
    assert out.shape == (n, out_feats)
    assert jnp.allclose(out, ref, atol=1e-2, rtol=1e-2), (
        f"mismatch vs reference for N={n}")


if __name__ == "__main__":
    key = jax.random.PRNGKey(0)
    k1, k2 = jax.random.split(key)

    # Small demo shapes (original toy problem): single-tile grid.
    _run_case(k1, n=16, in_feats=32, out_feats=32)
    # Slightly larger case to exercise the tiled multi-step grid (3x3 after padding).
    _run_case(k2, n=300, in_feats=80, out_feats=48)

    print("KERNEL_OK")
</pallas_src>

<mosaic_0001>
module attributes {stable_mosaic.version = 11 : i64} {
  func.func @gcn_kernel(%arg0: i32, %arg1: i32, %arg2: memref<128x128xbf16, #tpu.memory_space<vmem>>, %arg3: memref<128x128xf32, #tpu.memory_space<vmem>>, %arg4: memref<128x128xf32, #tpu.memory_space<vmem>>, %arg5: memref<1x128xf32, #tpu.memory_space<vmem>>, %arg6: memref<128x128xf32, #tpu.memory_space<vmem>>, %arg7: memref<128x128xf32, #tpu.memory_space<vmem>>) attributes {dimension_semantics = [#tpu.dimension_semantics<parallel>, #tpu.dimension_semantics<arbitrary>], iteration_bounds = array<i64: 1, 1>, scalar_prefetch = 0 : i64, scratch_operands = 1 : i64, tpu.core_type = #tpu.core_type<tc>, window_params = [{transform_indices = @transform_0, window_bounds = array<i64: 128, 128>}, {transform_indices = @transform_1, window_bounds = array<i64: 128, 128>}, {pipeline_mode = #tpu.pipeline_mode<synchronous>, transform_indices = @transform_2, window_bounds = array<i64: 128, 128>}, {pipeline_mode = #tpu.pipeline_mode<synchronous>, transform_indices = @transform_3, window_bounds = array<i64: 1, 128>}, {transform_indices = @transform_4, window_bounds = array<i64: 128, 128>}]} {
    %c0_i32 = arith.constant 0 : i32
    %0 = arith.cmpi eq, %arg1, %c0_i32 : i32
    %1 = arith.extui %0 : i1 to i32
    %c0_i32_0 = arith.constant 0 : i32
    %2 = arith.cmpi ne, %1, %c0_i32_0 : i32
    scf.if %2 {
      %cst_10 = arith.constant 0.000000e+00 : f32
      %13 = vector.broadcast %cst_10 : f32 to vector<128x128xf32>
      %c0_11 = arith.constant 0 : index
      %c0_12 = arith.constant 0 : index
      %14 = vector.load %arg7[%c0_11, %c0_12] : memref<128x128xf32, #tpu.memory_space<vmem>>, vector<128x128xf32>
      tpu.vector_store %arg7[%c0_11, %c0_12], %13 {strides = array<i32>} : memref<128x128xf32, #tpu.memory_space<vmem>>, vector<128x128xf32>,
    } else {
    }
    %c0 = arith.constant 0 : index
    %c0_1 = arith.constant 0 : index
    %3 = vector.load %arg2[%c0, %c0_1] : memref<128x128xbf16, #tpu.memory_space<vmem>>, vector<128x128xbf16>
    %4 = arith.extf %3 : vector<128x128xbf16> to vector<128x128xf32>
    %c0_2 = arith.constant 0 : index
    %c0_3 = arith.constant 0 : index
    %5 = vector.load %arg7[%c0_2, %c0_3] : memref<128x128xf32, #tpu.memory_space<vmem>>, vector<128x128xf32>
    %c0_4 = arith.constant 0 : index
    %c0_5 = arith.constant 0 : index
    %6 = vector.load %arg3[%c0_4, %c0_5] : memref<128x128xf32, #tpu.memory_space<vmem>>, vector<128x128xf32>
    %cst = arith.constant dense<0.000000e+00> : vector<128x128xf32>
    %7 = tpu.matmul %4, %6, %cst {dimension_numbers = #tpu.dot_dimension_numbers<[1], [0], [0], [1], [0, 0, 1, 1], [], []>} : vector<128x128xf32>, vector<128x128xf32>, vector<128x128xf32> -> vector<128x128xf32>
    %8 = arith.addf %5, %7 : vector<128x128xf32>
    %c0_6 = arith.constant 0 : index
    %c0_7 = arith.constant 0 : index
    %9 = vector.load %arg7[%c0_6, %c0_7] : memref<128x128xf32, #tpu.memory_space<vmem>>, vector<128x128xf32>
    tpu.vector_store %arg7[%c0_6, %c0_7], %8 {strides = array<i32>} : memref<128x128xf32, #tpu.memory_space<vmem>>, vector<128x128xf32>,
    %c0_i32_8 = arith.constant 0 : i32
    %10 = arith.cmpi eq, %arg1, %c0_i32_8 : i32
    %11 = arith.extui %10 : i1 to i32
    %c0_i32_9 = arith.constant 0 : i32
    %12 = arith.cmpi ne, %11, %c0_i32_9 : i32
    scf.if %12 {
      %c0_10 = arith.constant 0 : index
      %c0_11 = arith.constant 0 : index
      %13 = vector.load %arg7[%c0_10, %c0_11] : memref<128x128xf32, #tpu.memory_space<vmem>>, vector<128x128xf32>
      %c0_12 = arith.constant 0 : index
      %c0_13 = arith.constant 0 : index
      %14 = vector.load %arg4[%c0_12, %c0_13] : memref<128x128xf32, #tpu.memory_space<vmem>>, vector<128x128xf32>
      %cst_14 = arith.constant dense<0.000000e+00> : vector<128x128xf32>
      %15 = tpu.matmul %13, %14, %cst_14 {dimension_numbers = #tpu.dot_dimension_numbers<[1], [0], [0], [1], [0, 0, 1, 1], [], []>} : vector<128x128xf32>, vector<128x128xf32>, vector<128x128xf32> -> vector<128x128xf32>
      %c0_15 = arith.constant 0 : index
      %c0_16 = arith.constant 0 : index
      %16 = vector.load %arg5[%c0_15, %c0_16] : memref<1x128xf32, #tpu.memory_space<vmem>>, vector<1x128xf32>
      %17 = vector.broadcast %16 : vector<1x128xf32> to vector<128x128xf32>
      %18 = arith.addf %15, %17 : vector<128x128xf32>
      %cst_17 = arith.constant 0.000000e+00 : f32
      %19 = vector.broadcast %cst_17 : f32 to vector<128x128xf32>
      %20 = arith.maximumf %18, %19 : vector<128x128xf32>
      %c0_18 = arith.constant 0 : index
      %c0_19 = arith.constant 0 : index
      %21 = vector.load %arg6[%c0_18, %c0_19] : memref<128x128xf32, #tpu.memory_space<vmem>>, vector<128x128xf32>
      tpu.vector_store %arg6[%c0_18, %c0_19], %20 {strides = array<i32>} : memref<128x128xf32, #tpu.memory_space<vmem>>, vector<128x128xf32>,
    } else {
    }
    return
  }
  func.func @transform_0(%arg0: i32, %arg1: i32) -> (i32, i32) {
    %c0_i32 = arith.constant 0 : i32
    return %arg0, %arg1 : i32, i32
  }
  func.func @transform_1(%arg0: i32, %arg1: i32) -> (i32, i32) {
    %c0_i32 = arith.constant 0 : i32
    %c0_i32_0 = arith.constant 0 : i32
    return %arg1, %c0_i32 : i32, i32
  }
  func.func @transform_2(%arg0: i32, %arg1: i32) -> (i32, i32) {
    %c0_i32 = arith.constant 0 : i32
    %c0_i32_0 = arith.constant 0 : i32
    %c0_i32_1 = arith.constant 0 : i32
    return %c0_i32, %c0_i32_0 : i32, i32
  }
  func.func @transform_3(%arg0: i32, %arg1: i32) -> (i32, i32) {
    %c0_i32 = arith.constant 0 : i32
    %c0_i32_0 = arith.constant 0 : i32
    %c0_i32_1 = arith.constant 0 : i32
    return %c0_i32, %c0_i32_0 : i32, i32
  }
  func.func @transform_4(%arg0: i32, %arg1: i32) -> (i32, i32) {
    %c0_i32 = arith.constant 0 : i32
    %c0_i32_0 = arith.constant 0 : i32
    return %arg0, %c0_i32 : i32, i32
  }
}

</mosaic_0001>

<bundles_post_ra>
// kernel: tpu_custom_call.1
= control target key start
LH: loop header
LB: loop body
LE: loop exit
PB: predicated region body
PF: predicated region fallthrough
CT: control target
= control target key end

     0   :  { %9 = vsyncpa [#allocation4], 0  ;;  %s1036_s0 = inlined_call_operand.hbm [shape: bf16[128,128], index: 0, kind: input, shape index: {}]   ;;  %s1037_s1 = inlined_call_operand.hbm [shape: f32[128,128], index: 1, kind: input, shape index: {}]   ;;  %s1038_s2 = inlined_call_operand.hbm [shape: f32[128,128], index: 2, kind: input, shape index: {}]   ;;  %s1039_s3 = inlined_call_operand.vmem [shape: f32[1,128], index: 3, kind: input, shape index: {}]   ;;  %s1040_s4 = inlined_call_operand.hbm [shape: f32[128,128], index: 4, kind: output, shape index: {}]  }
   0x1   :  { %10 = vsyncpa [#allocation7], 0 }
   0x2   :  { %11 = vsyncpa [#allocation5], 0  ;;  %s939_s15 = smov [#allocation6]   ;;  %s845_s19 = scalar_lea.hbm %s1037_s1, 2048 }
   0x3   :  { %s29_s16 = sshll.u32 %s939_s15, 4  ;;  %p846_p0 = scmp.ne.s32.totalorder %s1037_s1, %s845_s19  ;;  %s30_s16 = int_to_ptr.vmem [resolvable:$true] %s29_s16 }
   0x4   :  { %p849_p1 = scmp.lt.u32.totalorder %s845_s19, %s1037_s1 }
   0x6   :  { %p851_p2 = pnand %p849_p1, %p846_p0 }
   0x8   :  { %854 = shalt.err (!%p851_p2)
}
   0x9   :  { %s855_s24 = scalar_lea.vmem %s30_s16, 2048  ;;  %p860_p4 = scmp.lt.s32.totalorder %s30_s16, %s30_s16 }
   0xa   :  { %p856_p3 = scmp.ne.s32.totalorder %s30_s16, %s855_s24  ;;  %p861_p5 = scmp.lt.s32.totalorder %s855_s24, %s855_s24 }
   0xc   :  { %p862_p6 = por %p861_p5, %p860_p4 }
   0xe   :  { %p863_p7 = pnand %p862_p6, %p856_p3 }
  0x10   :  { %866 = shalt.err (!%p863_p7)
}
  0x11   :  { %s940_s25 = smov 128   ;;  %s941_s26 = smov 8  }
  0x12   :  { %35 = dma.hbm_to_vmem [thread:$0]  %s1037_s1, 2048, %s30_s16, [#allocation7], %s940_s25, %s940_s25, %s941_s26  }
  0x13   :  { %s942_s29 = smov [#allocation3]   ;;  %s867_s7 = scalar_lea.hbm %s1036_s0, 1024 }
  0x14   :  { %s17_s30 = sshll.u32 %s942_s29, 4  ;;  %p868_p8 = scmp.ne.s32.totalorder %s1036_s0, %s867_s7  ;;  %s18_s30 = int_to_ptr.vmem [resolvable:$true] %s17_s30 }
  0x15   :  { %p871_p9 = scmp.lt.u32.totalorder %s867_s7, %s1036_s0 }
  0x17   :  { %p873_p10 = pnand %p871_p9, %p868_p8 }
  0x19   :  { %876 = shalt.err (!%p873_p10)
}
  0x1a   :  { %s877_s12 = scalar_lea.vmem %s18_s30, 1024  ;;  %p882_p12 = scmp.lt.s32.totalorder %s18_s30, %s18_s30 }
  0x1b   :  { %p878_p11 = scmp.ne.s32.totalorder %s18_s30, %s877_s12  ;;  %p883_p13 = scmp.lt.s32.totalorder %s877_s12, %s877_s12 }
  0x1d   :  { %p884_p0 = por %p883_p13, %p882_p12 }
  0x1f   :  { %p885_p1 = pnand %p884_p0, %p878_p11 }
  0x21   :  { %888 = shalt.err (!%p885_p1)
}
  0x22   :  { %s943_s1 = smov 64   ;;  %s944_s13 = smov 4  }
  0x23   :  { %23 = dma.hbm_to_vmem [thread:$0]  %s1036_s0, 1024, %s18_s30, [#allocation4], %s943_s1, %s943_s1, %s944_s13  }
  0x24   :  { %s945_s16 = smov [#allocation8]   ;;  %s889_s20 = scalar_lea.hbm %s1038_s2, 2048 }
  0x25   :  { %s41_s17 = sshll.u32 %s945_s16, 4  ;;  %p890_p2 = scmp.ne.s32.totalorder %s1038_s2, %s889_s20  ;;  %s42_s17 = int_to_ptr.vmem [resolvable:$true] %s41_s17 }
  0x26   :  { %p893_p3 = scmp.lt.u32.totalorder %s889_s20, %s1038_s2 }
  0x28   :  { %p895_p4 = pnand %p893_p3, %p890_p2 }
  0x2a   :  { %898 = shalt.err (!%p895_p4)
}
  0x2b   :  { %s899_s27 = scalar_lea.vmem %s42_s17, 2048  ;;  %p904_p6 = scmp.lt.s32.totalorder %s42_s17, %s42_s17 }
  0x2c   :  { %p900_p5 = scmp.ne.s32.totalorder %s42_s17, %s899_s27  ;;  %p905_p7 = scmp.lt.s32.totalorder %s899_s27, %s899_s27 }
  0x2e   :  { %p906_p8 = por %p905_p7, %p904_p6 }
  0x30   :  { %p907_p9 = pnand %p906_p8, %p900_p5 }
  0x32   :  { %910 = shalt.err (!%p907_p9)
}
  0x33   :  { %47 = dma.hbm_to_vmem [thread:$0]  %s1038_s2, 2048, %s42_s17, [#allocation7], %s940_s25, %s940_s25, %s941_s26  }
  0x34   :  { %933 = dma.done.wait [#allocation4], 1024  }
  0x35   :  { %934 = vsyncadd [#allocation4], 4294966272 }
  0x36   :  { %935 = dma.done.wait [#allocation7], 4096  }
  0x37   :  { %936 = vsyncadd [#allocation7], 4294963200  ;;  %v127_v0 = vld [vmem:[#allocation6] sm:$0xff]  ;;  %v128_v1 = vld [vmem:[#allocation6 + $0x8] sm:$0xff] }
  0x38   :  { %v129_v2 = vld [vmem:[#allocation6 + $0x10] sm:$0xff]  ;;  %v773_v3 = vpack.c.bf16 %v128_v1, %v127_v0  ;;  %v130_v4 = vld [vmem:[#allocation6 + $0x18] sm:$0xff]  ;;  %v131_v6 = vld [vmem:[#allocation6 + $0x20] sm:$0xff] }
  0x39   :  { %v777_v5 = vpack.c.bf16 %v130_v4, %v129_v2  ;;  %v132_v7 = vld [vmem:[#allocation6 + $0x28] sm:$0xff]  ;;  %v1014_v9 = vld [vmem:[#allocation3] sm:$0xff]   ;;  %v133_v10 = vld [vmem:[#allocation6 + $0x30] sm:$0xff] }
  0x3a   :  { %774 = vmatprep.subr.bf16.mxu0 %v773_v3  ;;  %v781_v8 = vpack.c.bf16 %v132_v7, %v131_v6  ;;  %v134_v11 = vld [vmem:[#allocation6 + $0x38] sm:$0xff]  ;;  %v560_v12 = vunpack.c.l.bf16 %v1014_v9  ;;  %v339_v13 = vld [vmem:[#allocation8] sm:$0xff]  ;;  %v340_v14 = vld [vmem:[#allocation8 + $0x8] sm:$0xff]  ;;  %v561_v48 = vunpack.c.h.bf16 %v1014_v9 }
  0x3b   :  { %776 = vmatpush3.bf16.msra.mxu0 %v773_v3  ;;  %v341_v15 = vld [vmem:[#allocation8 + $0x10] sm:$0xff]  ;;  %v785_v16 = vpack.c.bf16 %v134_v11, %v133_v10  ;;  %v342_v17 = vld [vmem:[#allocation8 + $0x18] sm:$0xff]  ;;  %v135_v18 = vld [vmem:[#allocation6 + $0x40] sm:$0xff]  ;;  %v805_v20 = vpack.c.bf16 %v340_v14, %v339_v13 }
  0x3c   :  { %778 = vmatprep.subr.bf16.mxu0 %v777_v5  ;;  %693 = vmatprep.mubr.f32.mxu0 %v560_v12  ;;  %v136_v19 = vld [vmem:[#allocation6 + $0x48] sm:$0xff]  ;;  %v809_v21 = vpack.c.bf16 %v342_v17, %v341_v15  ;;  %v343_v22 = vld [vmem:[#allocation8 + $0x20] sm:$0xff]  ;;  %v137_v25 = vld [vmem:[#allocation6 + $0x50] sm:$0xff] }
  0x3d   :  { %v344_v23 = vld [vmem:[#allocation8 + $0x28] sm:$0xff]  ;;  %806 = vmatprep.subr.bf16.mxu1 %v805_v20  ;;  %v789_v24 = vpack.c.bf16 %v136_v19, %v135_v18  ;;  %v138_v26 = vld [vmem:[#allocation6 + $0x58] sm:$0xff]  ;;  %v345_v28 = vld [vmem:[#allocation8 + $0x30] sm:$0xff] }
  0x3e   :  { %808 = vmatpush3.bf16.msra.mxu1 %v805_v20  ;;  %v813_v27 = vpack.c.bf16 %v344_v23, %v343_v22  ;;  %v346_v29 = vld [vmem:[#allocation8 + $0x38] sm:$0xff]  ;;  %v793_v30 = vpack.c.bf16 %v138_v26, %v137_v25  ;;  %v139_v31 = vld [vmem:[#allocation6 + $0x60] sm:$0xff]  ;;  %v140_v32 = vld [vmem:[#allocation6 + $0x68] sm:$0xff] }
  0x3f   :  { %780 = vmatpush3.bf16.msra.mxu0 %v777_v5  ;;  %810 = vmatprep.subr.bf16.mxu1 %v809_v21  ;;  %v817_v33 = vpack.c.bf16 %v346_v29, %v345_v28  ;;  %v347_v34 = vld [vmem:[#allocation8 + $0x40] sm:$0xff]  ;;  %v348_v35 = vld [vmem:[#allocation8 + $0x48] sm:$0xff]  ;;  %v797_v36 = vpack.c.bf16 %v140_v32, %v139_v31  ;;  %v141_v37 = vld [vmem:[#allocation6 + $0x70] sm:$0xff] }
  0x40   :  { %782 = vmatprep.subr.bf16.mxu0 %v781_v8  ;;  %v142_v38 = vld [vmem:[#allocation6 + $0x78] sm:$0xff]  ;;  %v821_v39 = vpack.c.bf16 %v348_v35, %v347_v34  ;;  %v349_v40 = vld [vmem:[#allocation8 + $0x50] sm:$0xff]  ;;  %v351_v44 = vld [vmem:[#allocation8 + $0x60] sm:$0xff] }
  0x41   :  { %v350_v41 = vld [vmem:[#allocation8 + $0x58] sm:$0xff]  ;;  %v801_v42 = vpack.c.bf16 %v142_v38, %v141_v37  ;;  %v352_v45 = vld [vmem:[#allocation8 + $0x68] sm:$0xff]  ;;  %v353_v49 = vld [vmem:[#allocation8 + $0x70] sm:$0xff] }
  0x42   :  { %812 = vmatpush3.bf16.msra.mxu1 %v809_v21  ;;  %v825_v43 = vpack.c.bf16 %v350_v41, %v349_v40  ;;  %v590_v46 = vld [vmem:[#allocation3 + $0x8] sm:$0xff]   ;;  %v829_v47 = vpack.c.bf16 %v352_v45, %v351_v44  ;;  %v354_v50 = vld [vmem:[#allocation8 + $0x78] sm:$0xff]  ;;  %v591_v52 = vld [vmem:[#allocation3 + $0x10] sm:$0xff]  }
  0x43   :  { %784 = vmatpush3.bf16.msra.mxu0 %v781_v8  ;;  %814 = vmatprep.subr.bf16.mxu1 %v813_v27  ;;  %v564_v51 = vunpack.c.l.bf16 %v590_v46  ;;  %v833_v53 = vpack.c.bf16 %v354_v50, %v353_v49  ;;  %v565_v54 = vunpack.c.h.bf16 %v590_v46  ;;  %v568_v55 = vunpack.c.l.bf16 %v591_v52  ;;  %v592_v56 = vld [vmem:[#allocation3 + $0x18] sm:$0xff]   ;;  %v593_v59 = vld [vmem:[#allocation3 + $0x20] sm:$0xff]   ;;  %v594_v62 = vld [vmem:[#allocation3 + $0x28] sm:$0xff]  }
  0x44   :  { %786 = vmatprep.subr.bf16.mxu0 %v785_v16  ;;  %v569_v57 = vunpack.c.h.bf16 %v591_v52  ;;  %v572_v58 = vunpack.c.l.bf16 %v592_v56  ;;  %v573_v60 = vunpack.c.h.bf16 %v592_v56  ;;  %v576_v61 = vunpack.c.l.bf16 %v593_v59  ;;  %v595_v1 = vld [vmem:[#allocation3 + $0x30] sm:$0xff]   ;;  %v596_v4 = vld [vmem:[#allocation3 + $0x38] sm:$0xff]  }
  0x45   :  { %v577_v63 = vunpack.c.h.bf16 %v593_v59  ;;  %v580_v0 = vunpack.c.l.bf16 %v594_v62  ;;  %v581_v2 = vunpack.c.h.bf16 %v594_v62  ;;  %v584_v3 = vunpack.c.l.bf16 %v595_v1 }
  0x46   :  { %816 = vmatpush3.bf16.msra.mxu1 %v813_v27  ;;  %v585_v5 = vunpack.c.h.bf16 %v595_v1  ;;  %v588_v6 = vunpack.c.l.bf16 %v596_v4  ;;  %v589_v7 = vunpack.c.h.bf16 %v596_v4 }
  0x47   :  { %788 = vmatpush3.bf16.msra.mxu0 %v785_v16  ;;  %818 = vmatprep.subr.bf16.mxu1 %v817_v33 }
  0x48   :  { %790 = vmatprep.subr.bf16.mxu0 %v789_v24 }
  0x4a   :  { %820 = vmatpush3.bf16.msra.mxu1 %v817_v33 }
  0x4b   :  { %792 = vmatpush3.bf16.msra.mxu0 %v789_v24  ;;  %822 = vmatprep.subr.bf16.mxu1 %v821_v39  ;;  %v557_v24 = vld [vmem:[%s1039_s3] ss:$0 sm:$0xff]  ;;  %s946_s3 = smov [#allocation9]  }
  0x4c   :  { %794 = vmatprep.subr.bf16.mxu0 %v793_v30  ;;  %s544_s30 = sshll.u32 %s946_s3, 4  ;;  %s545_s30 = int_to_ptr.vmem [resolvable:$true] %s544_s30 }
  0x4d   :  { %s911_s5 = scalar_lea.vmem %s545_s30, 2048  ;;  %p916_p11 = scmp.lt.s32.totalorder %s545_s30, %s545_s30 }
  0x4e   :  { %824 = vmatpush3.bf16.msra.mxu1 %v821_v39  ;;  %p912_p10 = scmp.ne.s32.totalorder %s545_s30, %s911_s5  ;;  %p917_p12 = scmp.lt.s32.totalorder %s911_s5, %s911_s5 }
  0x4f   :  { %796 = vmatpush3.bf16.msra.mxu0 %v793_v30  ;;  %826 = vmatprep.subr.bf16.mxu1 %v825_v43 }
  0x50   :  { %798 = vmatprep.subr.bf16.mxu0 %v797_v36  ;;  %p918_p13 = por %p917_p12, %p916_p11 }
  0x52   :  { %828 = vmatpush3.bf16.msra.mxu1 %v825_v43  ;;  %p919_p0 = pnand %p918_p13, %p912_p10 }
  0x53   :  { %800 = vmatpush3.bf16.msra.mxu0 %v797_v36  ;;  %830 = vmatprep.subr.bf16.mxu1 %v829_v47 }
  0x54   :  { %802 = vmatprep.subr.bf16.mxu0 %v801_v42 }
  0x56   :  { %832 = vmatpush3.bf16.msra.mxu1 %v829_v47 }
  0x57   :  { %804 = vmatpush3.bf16.msra.mxu0 %v801_v42  ;;  %834 = vmatprep.subr.bf16.mxu1 %v833_v53 }
  0x5a   :  { %694 = vmatmul.mubr.f32.vlgmr.msra.gmra.mrb[0].mxu0 %v561_v48  ;;  %836 = vmatpush3.bf16.msra.mxu1 %v833_v53 }
  0x5b   :  { %696 = vmatprep.mubr.f32.mxu0 %v564_v51 }
  0x5e   :  { %697 = vmatmul.mubr.f32.gmra.mrb[2].mxu0 %v565_v54 }
  0x5f   :  { %699 = vmatprep.mubr.f32.mxu0 %v568_v55 }
  0x62   :  { %700 = vmatmul.mubr.f32.gmra.mrb[4].mxu0 %v569_v57 }
  0x63   :  { %702 = vmatprep.mubr.f32.mxu0 %v572_v58 }
  0x66   :  { %703 = vmatmul.mubr.f32.gmra.mrb[6].mxu0 %v573_v60 }
  0x67   :  { %705 = vmatprep.mubr.f32.mxu0 %v576_v61 }
  0x6a   :  { %706 = vmatmul.mubr.f32.gmra.mrb[8].mxu0 %v577_v63 }
  0x6b   :  { %708 = vmatprep.mubr.f32.mxu0 %v580_v0 }
  0x6e   :  { %709 = vmatmul.mubr.f32.gmra.mrb[10].mxu0 %v581_v2 }
  0x6f   :  { %711 = vmatprep.mubr.f32.mxu0 %v584_v3 }
  0x72   :  { %712 = vmatmul.mubr.f32.gmra.mrb[12].mxu0 %v585_v5 }
  0x73   :  { %714 = vmatprep.mubr.f32.mxu0 %v588_v6 }
  0x76   :  { %715 = vmatmul.mubr.f32.gmra.mrb[14].mxu0 %v589_v7 }
 0x12d   :  { %v695_v8 = vpop.f32.mrb[0].mxu0 }
 0x12e   :  { %v209_v9 = vpop.f32.mrb[1].mxu0 }
 0x12f   :  { %749 = vmatprep.mubr.f32.mxu1 %v209_v9 }
 0x130   :  { %750 = vmatmul.mubr.f32.vlgmr.msra.gmra.mrb[0].mxu1 %v695_v8 }
 0x131   :  { %v698_v10 = vpop.f32.mrb[2].mxu0 }
 0x132   :  { %v219_v11 = vpop.f32.mrb[3].mxu0 }
 0x133   :  { %752 = vmatprep.mubr.f32.mxu1 %v219_v11 }
 0x134   :  { %753 = vmatmul.mubr.f32.gmra.mrb[2].mxu1 %v698_v10 }
 0x135   :  { %v701_v12 = vpop.f32.mrb[4].mxu0 }
 0x136   :  { %v229_v13 = vpop.f32.mrb[5].mxu0 }
 0x137   :  { %755 = vmatprep.mubr.f32.mxu1 %v229_v13 }
 0x138   :  { %756 = vmatmul.mubr.f32.gmra.mrb[4].mxu1 %v701_v12 }
 0x139   :  { %v704_v14 = vpop.f32.mrb[6].mxu0 }
 0x13a   :  { %v239_v15 = vpop.f32.mrb[7].mxu0 }
 0x13b   :  { %758 = vmatprep.mubr.f32.mxu1 %v239_v15 }
 0x13c   :  { %759 = vmatmul.mubr.f32.gmra.mrb[6].mxu1 %v704_v14 }
 0x13d   :  { %v707_v16 = vpop.f32.mrb[8].mxu0 }
 0x13e   :  { %v249_v17 = vpop.f32.mrb[9].mxu0 }
 0x13f   :  { %761 = vmatprep.mubr.f32.mxu1 %v249_v17 }
 0x140   :  { %762 = vmatmul.mubr.f32.gmra.mrb[8].mxu1 %v707_v16 }
 0x141   :  { %v710_v18 = vpop.f32.mrb[10].mxu0 }
 0x142   :  { %v259_v19 = vpop.f32.mrb[11].mxu0 }
 0x143   :  { %764 = vmatprep.mubr.f32.mxu1 %v259_v19 }
 0x144   :  { %765 = vmatmul.mubr.f32.gmra.mrb[10].mxu1 %v710_v18 }
 0x145   :  { %v713_v20 = vpop.f32.mrb[12].mxu0 }
 0x146   :  { %v269_v21 = vpop.f32.mrb[13].mxu0 }
 0x147   :  { %767 = vmatprep.mubr.f32.mxu1 %v269_v21 }
 0x148   :  { %768 = vmatmul.mubr.f32.gmra.mrb[12].mxu1 %v713_v20 }
 0x149   :  { %v716_v22 = vpop.f32.mrb[14].mxu0 }
 0x14a   :  { %v279_v23 = vpop.f32.mrb[15].mxu0 }
 0x14b   :  { %770 = vmatprep.mubr.f32.mxu1 %v279_v23 }
 0x14c   :  { %771 = vmatmul.mubr.f32.gmra.mrb[14].mxu1 %v716_v22 }
 0x203   :  { %v751_v25 = vpop.f32.mrb[0].mxu1 }
 0x204   :  { %v434_v26 = vadd.f32 %v751_v25, %v557_v24  ;;  %v428_v27 = vpop.f32.mrb[1].mxu1 }
 0x205   :  { %v429_v28 = vadd.f32 %v557_v24, %v428_v27 }
 0x206   :  { %v508_v29 = vmax.f32 %v434_v26, 0.0 }
 0x207   :  { %v507_v30 = vmax.f32 %v429_v28, 0.0  ;;  %v754_v31 = vpop.f32.mrb[2].mxu1 }
 0x208   :  { %524 = vst [vmem:[#allocation9 + $0x8] sm:$0xff] %v508_v29  ;;  %v444_v32 = vadd.f32 %v754_v31, %v557_v24  ;;  %v438_v33 = vpop.f32.mrb[3].mxu1 }
 0x209   :  { %523 = vst [vmem:[#allocation9] sm:$0xff] %v507_v30  ;;  %v439_v34 = vadd.f32 %v557_v24, %v438_v33 }
 0x20a   :  { %v510_v35 = vmax.f32 %v444_v32, 0.0 }
 0x20b   :  { %v509_v36 = vmax.f32 %v439_v34, 0.0  ;;  %v757_v37 = vpop.f32.mrb[4].mxu1 }
 0x20c   :  { %526 = vst [vmem:[#allocation9 + $0x18] sm:$0xff] %v510_v35  ;;  %v454_v38 = vadd.f32 %v757_v37, %v557_v24  ;;  %v448_v39 = vpop.f32.mrb[5].mxu1 }
 0x20d   :  { %525 = vst [vmem:[#allocation9 + $0x10] sm:$0xff] %v509_v36  ;;  %v449_v40 = vadd.f32 %v557_v24, %v448_v39 }
 0x20e   :  { %v512_v41 = vmax.f32 %v454_v38, 0.0 }
 0x20f   :  { %v511_v42 = vmax.f32 %v449_v40, 0.0  ;;  %v760_v43 = vpop.f32.mrb[6].mxu1 }
 0x210   :  { %528 = vst [vmem:[#allocation9 + $0x28] sm:$0xff] %v512_v41  ;;  %v464_v44 = vadd.f32 %v760_v43, %v557_v24  ;;  %v458_v45 = vpop.f32.mrb[7].mxu1 }
 0x211   :  { %527 = vst [vmem:[#allocation9 + $0x20] sm:$0xff] %v511_v42  ;;  %v459_v46 = vadd.f32 %v557_v24, %v458_v45 }
 0x212   :  { %v514_v47 = vmax.f32 %v464_v44, 0.0 }
 0x213   :  { %v513_v48 = vmax.f32 %v459_v46, 0.0  ;;  %v763_v49 = vpop.f32.mrb[8].mxu1 }
 0x214   :  { %530 = vst [vmem:[#allocation9 + $0x38] sm:$0xff] %v514_v47  ;;  %v474_v50 = vadd.f32 %v763_v49, %v557_v24  ;;  %v468_v51 = vpop.f32.mrb[9].mxu1 }
 0x215   :  { %529 = vst [vmem:[#allocation9 + $0x30] sm:$0xff] %v513_v48  ;;  %v469_v52 = vadd.f32 %v557_v24, %v468_v51 }
 0x216   :  { %v516_v53 = vmax.f32 %v474_v50, 0.0 }
 0x217   :  { %v515_v54 = vmax.f32 %v469_v52, 0.0  ;;  %v766_v55 = vpop.f32.mrb[10].mxu1 }
 0x218   :  { %532 = vst [vmem:[#allocation9 + $0x48] sm:$0xff] %v516_v53  ;;  %v484_v56 = vadd.f32 %v766_v55, %v557_v24  ;;  %v478_v57 = vpop.f32.mrb[11].mxu1 }
 0x219   :  { %531 = vst [vmem:[#allocation9 + $0x40] sm:$0xff] %v515_v54  ;;  %v479_v58 = vadd.f32 %v557_v24, %v478_v57 }
 0x21a   :  { %v518_v59 = vmax.f32 %v484_v56, 0.0 }
 0x21b   :  { %v517_v60 = vmax.f32 %v479_v58, 0.0  ;;  %v769_v61 = vpop.f32.mrb[12].mxu1 }
 0x21c   :  { %534 = vst [vmem:[#allocation9 + $0x58] sm:$0xff] %v518_v59  ;;  %v494_v62 = vadd.f32 %v769_v61, %v557_v24  ;;  %v488_v63 = vpop.f32.mrb[13].mxu1 }
 0x21d   :  { %533 = vst [vmem:[#allocation9 + $0x50] sm:$0xff] %v517_v60  ;;  %v489_v0 = vadd.f32 %v557_v24, %v488_v63 }
 0x21e   :  { %v520_v1 = vmax.f32 %v494_v62, 0.0 }
 0x21f   :  { %v519_v2 = vmax.f32 %v489_v0, 0.0  ;;  %v772_v3 = vpop.f32.mrb[14].mxu1 }
 0x220   :  { %536 = vst [vmem:[#allocation9 + $0x68] sm:$0xff] %v520_v1  ;;  %v504_v4 = vadd.f32 %v772_v3, %v557_v24  ;;  %v498_v5 = vpop.f32.mrb[15].mxu1 }
 0x221   :  { %535 = vst [vmem:[#allocation9 + $0x60] sm:$0xff] %v519_v2  ;;  %v499_v6 = vadd.f32 %v557_v24, %v498_v5 }
 0x222   :  { %v522_v7 = vmax.f32 %v504_v4, 0.0 }
 0x223   :  { %v521_v8 = vmax.f32 %v499_v6, 0.0 }
 0x224   :  { %538 = vst [vmem:[#allocation9 + $0x78] sm:$0xff] %v522_v7 }
 0x225   :  { %537 = vst [vmem:[#allocation9 + $0x70] sm:$0xff] %v521_v8 }
 0x226   :  { %922 = shalt.err (!%p919_p0)
}
 0x227   :  { %s923_s8 = scalar_lea.hbm %s1040_s4, 2048 }
 0x228   :  { %p924_p1 = scmp.ne.s32.totalorder %s1040_s4, %s923_s8  ;;  %p927_p2 = scmp.lt.u32.totalorder %s923_s8, %s1040_s4 }
 0x22a   :  { %p929_p3 = pnand %p927_p2, %p924_p1 }
 0x22c   :  { %932 = shalt.err (!%p929_p3)
}
 0x22d   :  { %550 = dma.vmem_to_hbm [thread:$0]  %s545_s30, 2048, %s1040_s4, [#allocation5], %s940_s25, %s940_s25, %s941_s26  }
 0x22e   :  { %937 = dma.done.wait [#allocation5], 2048  }
 0x22f   :  { %938 = vsyncadd [#allocation5], 4294965248 }
 0x230   :  { %554 = vsyncpa [#allocation4], 1 }
 0x231   :  { %555 = vsyncpa [#allocation7], 1 }
 0x232   :  { %556 = vsyncpa [#allocation5], 1 }

</bundles_post_ra>
